<compile_context>
chip_gen: v7x
topology: tpu7x:2x2x1
jax: 0.10.0
libtpu: 0.0.40
codegen_flags: <defaults>
</compile_context>

<pallas_src>
import functools

import jax
import jax.numpy as jnp
import numpy as np
from jax import lax
from jax.experimental import pallas as pl
from jax.experimental.pallas import tpu as pltpu


def _dwblock_kernel(x_top_ref,      # (1, 1,  W, C)  row j*TH - 1 (clamped)
                    x_body_ref,     # (1, TH, W, C)  rows [j*TH, (j+1)*TH)
                    x_bot_ref,      # (1, 1,  W, C)  row (j+1)*TH (clamped)
                    w_dw_ref,       # (3, 3, C) f32  depthwise weights, BN scale folded in
                    bias_dw_ref,    # (1, C)    f32  folded BN bias (dw)
                    w_sep_ref,      # (C, P)         1x1 weights (mxu_dtype), BN scale folded in
                    bias_sep_ref,   # (1, P)    f32  folded BN bias (sep)
                    alpha_ref,      # (1, 1) SMEM    PReLU slope (unused for plain ReLU)
                    out_ref,        # (1, TH, W, P)
                    *, prelu, mxu_dtype):
    TH, W, P = out_ref.shape[1], out_ref.shape[2], out_ref.shape[3]
    C = x_body_ref.shape[-1]
    in_dtype = x_body_ref.dtype
    j = pl.program_id(1)
    n_j = pl.num_programs(1)

    # The halo rows come from clamped index_maps; zero them at the image border.
    top_mask = jnp.minimum(j, 1).astype(jnp.float32)            # 0 iff j == 0
    bot_mask = jnp.minimum(n_j - 1 - j, 1).astype(jnp.float32)  # 0 iff last tile
    top = (x_top_ref[0].astype(jnp.float32) * top_mask).astype(in_dtype)
    bot = (x_bot_ref[0].astype(jnp.float32) * bot_mask).astype(in_dtype)

    # (TH+2, W, C) input window kept in the activation dtype (no f32 copy).
    rows = jnp.concatenate([top, x_body_ref[0], bot], axis=0)
    zcol = jnp.zeros((TH + 2, 1, C), in_dtype)

    # ---- depthwise 3x3 (stride 1, pad 1), f32 accumulation on the VPU ----
    # BN scale is folded into w_dw, so the accumulator starts at the folded bias.
    # Column shifts are built once per kw and reused for all three kh taps.
    w_dw = w_dw_ref[...]                                         # (3, 3, C) f32
    acc = jnp.broadcast_to(bias_dw_ref[...].reshape(1, 1, C), (TH, W, C))
    for kw in range(3):
        if kw == 0:
            xk = jnp.concatenate([zcol, rows[:, :W - 1, :]], axis=1)
        elif kw == 1:
            xk = rows
        else:
            xk = jnp.concatenate([rows[:, 1:, :], zcol], axis=1)
        for kh in range(3):
            acc = acc + xk[kh:kh + TH] * w_dw[kh, kw]            # promotes to f32

    # ---- activation (BN already folded) ----
    if prelu:
        alpha = alpha_ref[0, 0]
        dw = jnp.where(acc > 0, acc, alpha * acc)
    else:
        dw = jnp.maximum(acc, 0.0)

    # ---- 1x1 pointwise conv == (TH*W, C) @ (C, P) matmul on the MXU ----
    # W % 8 == 0 -> the (TH, W, C) -> (TH*W, C) collapse stays a free view.
    flat = dw.reshape(TH * W, C).astype(mxu_dtype)
    sep = jnp.dot(flat, w_sep_ref[...], preferred_element_type=jnp.float32)
    sep = sep + bias_sep_ref[...]                                # BN scale folded into w_sep
    if prelu:
        sep = jnp.where(sep > 0, sep, alpha * sep)
    else:
        sep = jnp.maximum(sep, 0.0)

    out_ref[...] = sep.reshape(1, TH, W, P).astype(out_ref.dtype)


def _fold_bn(gamma, beta, mean, var, eps=1e-5):
    scale = gamma / jnp.sqrt(var + eps)
    bias = beta - mean * scale
    return (scale.reshape(1, -1).astype(jnp.float32),
            bias.reshape(1, -1).astype(jnp.float32))


def _vmem_budget_bytes():
    """Per-generation VMEM budget: 48 MiB limit on v7x, 96 MiB on v5e/v6e."""
    cap = 64 * 1024 * 1024                       # conservative default (v7x per-TC)
    try:
        cap = int(pltpu.get_tpu_info().vmem_capacity_bytes)
    except Exception:
        pass
    limit = min(int(cap * 3 // 4), 96 * 1024 * 1024)
    budget = int(limit * 11 // 20)               # ~55% of the limit for the tile picker
    return budget, limit


def _tile_working_set_bytes(th, W, C, P, in_bytes, out_bytes, mxu_bytes):
    """Conservative per-step VMEM estimate (streams + weights + intermediates)."""
    stream = 2 * (th * W * C * in_bytes          # body block (double-buffered)
                  + 2 * W * C * in_bytes         # two halo rows
                  + th * W * P * out_bytes)      # output block
    weights = 9 * C * 4 + C * P * mxu_bytes + (C + 2 * P) * 4
    interm = (3 * (th + 2) * W * C * in_bytes    # window + up to 2 shifted copies
              + th * W * C * 4                   # f32 depthwise accumulator
              + th * W * C * mxu_bytes           # MXU lhs cast
              + th * W * P * 4)                  # f32 matmul result
    return stream + weights + interm


def _pick_tile_h(N, H, W, C, P, in_bytes, out_bytes, mxu_bytes, budget_bytes):
    """Largest divisor of H that fits the budget; keep >=2 grid steps for 2-TC chips."""
    cands = [th for th in range(1, H + 1) if H % th == 0]
    multi = [th for th in cands if N * (H // th) >= 2]
    if multi:
        cands = multi
    best = cands[0]
    for th in cands:
        if _tile_working_set_bytes(th, W, C, P, in_bytes, out_bytes, mxu_bytes) <= budget_bytes:
            best = max(best, th)
    return best


def depthwise_block_forward(x_nchw, params, *, prelu=False, tile_h=None,
                            mxu_dtype=jnp.bfloat16):
    """DepthWiseBlock forward (stride=1). x_nchw: (N, C, H, W) -> (N, P, H, W)."""
    # TODO(synk): stride > 1 not implemented (module default stride=1 is covered).
    N, C, H, W = x_nchw.shape
    P = params["w_sep"].shape[1]
    if W % 8 != 0:
        # TODO(synk): pad W to a multiple of 8 for MobileNet's W=7/14 stages so the
        # (TH, W, C) <-> (TH*W, C) reshapes around the MXU stay free views.
        raise NotImplementedError("W must be a multiple of 8")

    scale_dw, bias_dw = _fold_bn(params["bn_dw_gamma"], params["bn_dw_beta"],
                                 params["bn_dw_mean"], params["bn_dw_var"])
    scale_sep, bias_sep = _fold_bn(params["bn_sep_gamma"], params["bn_sep_beta"],
                                   params["bn_sep_mean"], params["bn_sep_var"])
    # Fold the BN scales directly into the conv weights.
    w_dw = params["w_dw"].astype(jnp.float32) * scale_dw.reshape(1, 1, C)
    w_sep = (params["w_sep"].astype(jnp.float32) * scale_sep.reshape(1, P)).astype(mxu_dtype)
    alpha = jnp.asarray(params["prelu_alpha"], jnp.float32).reshape(1, 1)

    # NCHW -> NHWC (channels on the 128-lane axis).  No jnp.pad: the 3x3 halo is
    # assembled in-kernel (clamped halo-row index_maps + border masking and zero
    # columns for the W edges), which removes a full HBM pass over the tensor.
    # TODO(synk): in a full network keep activations NHWC end-to-end (and bf16)
    # so this transpose also disappears; C/P < 128 layers could additionally be
    # channel-padded for lane-dense stores.
    x_nhwc = jnp.transpose(x_nchw, (0, 2, 3, 1))

    in_bytes = jnp.dtype(x_nchw.dtype).itemsize
    mxu_bytes = jnp.dtype(mxu_dtype).itemsize
    budget, vmem_limit = _vmem_budget_bytes()
    TH = tile_h if tile_h is not None else _pick_tile_h(
        N, H, W, C, P, in_bytes, in_bytes, mxu_bytes, budget)
    assert H % TH == 0, "tile_h must divide H"
    n_th = H // TH

    kernel = functools.partial(_dwblock_kernel, prelu=prelu, mxu_dtype=mxu_dtype)

    out_nhwc = pl.pallas_call(
        kernel,
        out_shape=jax.ShapeDtypeStruct((N, H, W, P), x_nchw.dtype),
        grid=(N, n_th),
        in_specs=[
            # top halo: row j*TH - 1 (clamped to 0; masked in-kernel when j == 0)
            pl.BlockSpec((1, 1, W, C),
                         lambda n, j: (n, jnp.maximum(j * TH - 1, 0), 0, 0)),
            # body rows [j*TH, (j+1)*TH)
            pl.BlockSpec((1, TH, W, C), lambda n, j: (n, j, 0, 0)),
            # bottom halo: row (j+1)*TH (clamped to H-1; masked when j == n_th-1)
            pl.BlockSpec((1, 1, W, C),
                         lambda n, j: (n, jnp.minimum((j + 1) * TH, H - 1), 0, 0)),
            # weights / folded-BN params: constant index maps -> VMEM-resident
            pl.BlockSpec((3, 3, C), lambda n, j: (0, 0, 0)),
            pl.BlockSpec((1, C), lambda n, j: (0, 0)),
            pl.BlockSpec((C, P), lambda n, j: (0, 0)),
            pl.BlockSpec((1, P), lambda n, j: (0, 0)),
            # PReLU slope as an SMEM scalar
            pl.BlockSpec(memory_space=pltpu.MemorySpace.SMEM),
        ],
        out_specs=pl.BlockSpec((1, TH, W, P), lambda n, j: (n, j, 0, 0)),
        compiler_params=pltpu.CompilerParams(
            dimension_semantics=("parallel", "parallel"),
            vmem_limit_bytes=vmem_limit,
        ),
    )(x_nhwc, x_nhwc, x_nhwc, w_dw, bias_dw, w_sep, bias_sep, alpha)

    # NHWC -> NCHW to match the PyTorch output convention.
    return jnp.transpose(out_nhwc, (0, 3, 1, 2))


def _reference_forward(x_nchw, params, *, prelu=False):
    """Pure-JAX f32 reference (lax conv + einsum at HIGHEST precision)."""
    eps = 1e-5
    C = x_nchw.shape[1]
    x = jnp.transpose(x_nchw, (0, 2, 3, 1)).astype(jnp.float32)

    w_dw_hwio = params["w_dw"].astype(jnp.float32).reshape(3, 3, 1, C)
    dw = lax.conv_general_dilated(
        x, w_dw_hwio, window_strides=(1, 1), padding=((1, 1), (1, 1)),
        dimension_numbers=("NHWC", "HWIO", "NHWC"), feature_group_count=C,
        precision=lax.Precision.HIGHEST)

    def bn(y, g, b, m, v):
        return (y - m) / jnp.sqrt(v + eps) * g + b

    def act(y):
        a = params["prelu_alpha"] if prelu else 0.0
        return jnp.where(y > 0, y, a * y)

    dw = act(bn(dw, params["bn_dw_gamma"], params["bn_dw_beta"],
                params["bn_dw_mean"], params["bn_dw_var"]))
    sep = jnp.einsum("nhwc,cp->nhwp", dw, params["w_sep"].astype(jnp.float32),
                     precision=lax.Precision.HIGHEST)
    sep = act(bn(sep, params["bn_sep_gamma"], params["bn_sep_beta"],
                 params["bn_sep_mean"], params["bn_sep_var"]))
    return jnp.transpose(sep, (0, 3, 1, 2)).astype(x_nchw.dtype)


def make_params(key, inplanes, planes):
    ks = jax.random.split(key, 8)
    return {
        # conv_dw: PyTorch weight (C,1,3,3) -> stored here as (3,3,C)
        "w_dw": jax.random.normal(ks[0], (3, 3, inplanes), jnp.float32) * 0.2,
        # conv_sep: PyTorch weight (P,C,1,1) -> stored here as (C,P)
        "w_sep": jax.random.normal(ks[1], (inplanes, planes), jnp.float32) * 0.2,
        "bn_dw_gamma": 1.0 + 0.1 * jax.random.normal(ks[2], (inplanes,), jnp.float32),
        "bn_dw_beta": 0.1 * jax.random.normal(ks[3], (inplanes,), jnp.float32),
        "bn_dw_mean": 0.1 * jax.random.normal(ks[4], (inplanes,), jnp.float32),
        "bn_dw_var": jnp.abs(jax.random.normal(ks[5], (inplanes,), jnp.float32)) * 0.5 + 1.0,
        "bn_sep_gamma": 1.0 + 0.1 * jax.random.normal(ks[6], (planes,), jnp.float32),
        "bn_sep_beta": 0.1 * jax.random.normal(ks[7], (planes,), jnp.float32),
        "bn_sep_mean": jnp.zeros((planes,), jnp.float32),
        "bn_sep_var": jnp.ones((planes,), jnp.float32),
        "prelu_alpha": 0.25,  # PyTorch nn.PReLU default (shared slope)
        # TODO(synk): nn.PReLU(num_parameters=C) (per-channel slope) not supported.
    }


if __name__ == "__main__":
    key = jax.random.PRNGKey(0)
    k_x, k_p = jax.random.split(key)

    N, C, H, W = 2, 4, 16, 16   # inplanes=4
    P = 8                       # planes=8
    x = jax.random.normal(k_x, (N, C, H, W), jnp.float32)
    params = make_params(k_p, C, P)

    configs = [
        # f32 MXU path, multi-row-tile grid -> tight structural check of halos/masking
        dict(prelu=False, tile_h=8, mxu_dtype=jnp.float32, rtol=1e-4, atol=1e-4),
        # default bf16 MXU path, auto-picked tile (single H tile per batch image)
        dict(prelu=False, tile_h=None, mxu_dtype=jnp.bfloat16, rtol=5e-2, atol=5e-2),
        # PReLU (SMEM alpha) + bf16 MXU, different row tiling
        dict(prelu=True, tile_h=4, mxu_dtype=jnp.bfloat16, rtol=5e-2, atol=5e-2),
    ]
    for cfg in configs:
        out = depthwise_block_forward(x, params, prelu=cfg["prelu"],
                                      tile_h=cfg["tile_h"],
                                      mxu_dtype=cfg["mxu_dtype"])
        out = jax.block_until_ready(out)
        assert out.shape == (N, P, H, W)
        ref = _reference_forward(x, params, prelu=cfg["prelu"])
        np.testing.assert_allclose(np.asarray(out.astype(jnp.float32)),
                                   np.asarray(ref.astype(jnp.float32)),
                                   rtol=cfg["rtol"], atol=cfg["atol"])

    print("KERNEL_OK")
</pallas_src>

<mosaic_0001>
module attributes {stable_mosaic.version = 11 : i64} {
  func.func @_dwblock_kernel(%arg0: i32, %arg1: i32, %arg2: memref<1x1x16x4xf32, #tpu.memory_space<vmem>>, %arg3: memref<1x8x16x4xf32, #tpu.memory_space<vmem>>, %arg4: memref<1x1x16x4xf32, #tpu.memory_space<vmem>>, %arg5: memref<3x3x4xf32, #tpu.memory_space<vmem>>, %arg6: memref<1x4xf32, #tpu.memory_space<vmem>>, %arg7: memref<4x8xf32, #tpu.memory_space<vmem>>, %arg8: memref<1x8xf32, #tpu.memory_space<vmem>>, %arg9: memref<1x1xf32, #tpu.memory_space<smem>>, %arg10: memref<1x8x16x8xf32, #tpu.memory_space<vmem>>) attributes {dimension_semantics = [#tpu.dimension_semantics<parallel>, #tpu.dimension_semantics<parallel>], iteration_bounds = array<i64: 2, 2>, scalar_prefetch = 0 : i64, scratch_operands = 0 : i64, tpu.core_type = #tpu.core_type<tc>, window_params = [{transform_indices = @transform_0, window_bounds = array<i64: 1, 1, 16, 4>}, {transform_indices = @transform_1, window_bounds = array<i64: 1, 8, 16, 4>}, {transform_indices = @transform_2, window_bounds = array<i64: 1, 1, 16, 4>}, {pipeline_mode = #tpu.pipeline_mode<synchronous>, transform_indices = @transform_3, window_bounds = array<i64: 3, 3, 4>}, {pipeline_mode = #tpu.pipeline_mode<synchronous>, transform_indices = @transform_4, window_bounds = array<i64: 1, 4>}, {pipeline_mode = #tpu.pipeline_mode<synchronous>, transform_indices = @transform_5, window_bounds = array<i64: 4, 8>}, {pipeline_mode = #tpu.pipeline_mode<synchronous>, transform_indices = @transform_6, window_bounds = array<i64: 1, 8>}, {transform_indices = @transform_7, window_bounds = array<i64: 1, 1>}, {transform_indices = @transform_8, window_bounds = array<i64: 1, 8, 16, 8>}]} {
    %c1_i32 = arith.constant 1 : i32
    %0 = arith.minsi %arg1, %c1_i32 : i32
    %1 = arith.sitofp %0 : i32 to f32
    %c1_i32_0 = arith.constant 1 : i32
    %2 = arith.subi %c1_i32_0, %arg1 : i32
    %c1_i32_1 = arith.constant 1 : i32
    %3 = arith.minsi %2, %c1_i32_1 : i32
    %4 = arith.sitofp %3 : i32 to f32
    %c0 = arith.constant 0 : index
    %c0_2 = arith.constant 0 : index
    %c0_3 = arith.constant 0 : index
    %c0_4 = arith.constant 0 : index
    %5 = vector.load %arg2[%c0, %c0_2, %c0_3, %c0_4] : memref<1x1x16x4xf32, #tpu.memory_space<vmem>>, vector<1x1x16x4xf32>
    %6 = vector.shape_cast %5 : vector<1x1x16x4xf32> to vector<1x16x4xf32>
    %7 = vector.broadcast %1 : f32 to vector<1x16x4xf32>
    %8 = arith.mulf %6, %7 : vector<1x16x4xf32>
    %c0_5 = arith.constant 0 : index
    %c0_6 = arith.constant 0 : index
    %c0_7 = arith.constant 0 : index
    %c0_8 = arith.constant 0 : index
    %9 = vector.load %arg4[%c0_5, %c0_6, %c0_7, %c0_8] : memref<1x1x16x4xf32, #tpu.memory_space<vmem>>, vector<1x1x16x4xf32>
    %10 = vector.shape_cast %9 : vector<1x1x16x4xf32> to vector<1x16x4xf32>
    %11 = vector.broadcast %4 : f32 to vector<1x16x4xf32>
    %12 = arith.mulf %10, %11 : vector<1x16x4xf32>
    %c0_9 = arith.constant 0 : index
    %c0_10 = arith.constant 0 : index
    %c0_11 = arith.constant 0 : index
    %c0_12 = arith.constant 0 : index
    %13 = vector.load %arg3[%c0_9, %c0_10, %c0_11, %c0_12] : memref<1x8x16x4xf32, #tpu.memory_space<vmem>>, vector<1x8x16x4xf32>
    %14 = vector.shape_cast %13 : vector<1x8x16x4xf32> to vector<8x16x4xf32>
    %15 = tpu.concatenate %8, %14, %12 in 0 : vector<1x16x4xf32>, vector<8x16x4xf32>, vector<1x16x4xf32> -> vector<10x16x4xf32>
    %cst = arith.constant 0.000000e+00 : f32
    %16 = vector.broadcast %cst : f32 to vector<10x1x4xf32>
    %c0_13 = arith.constant 0 : index
    %c0_14 = arith.constant 0 : index
    %c0_15 = arith.constant 0 : index
    %17 = vector.load %arg5[%c0_13, %c0_14, %c0_15] : memref<3x3x4xf32, #tpu.memory_space<vmem>>, vector<3x3x4xf32>
    %c0_16 = arith.constant 0 : index
    %c0_17 = arith.constant 0 : index
    %18 = vector.load %arg6[%c0_16, %c0_17] : memref<1x4xf32, #tpu.memory_space<vmem>>, vector<1x4xf32>
    %19 = vector.shape_cast %18 : vector<1x4xf32> to vector<1x1x4xf32>
    %20 = vector.shape_cast %19 : vector<1x1x4xf32> to vector<1x1x4xf32>
    %21 = vector.broadcast %20 : vector<1x1x4xf32> to vector<8x16x4xf32>
    %22 = vector.extract_strided_slice %15 {offsets = [0, 0, 0], sizes = [10, 15, 4], strides = [1, 1, 1]} : vector<10x16x4xf32> to vector<10x15x4xf32>
    %23 = tpu.concatenate %16, %22 in 1 : vector<10x1x4xf32>, vector<10x15x4xf32> -> vector<10x16x4xf32>
    %24 = vector.extract_strided_slice %23 {offsets = [0, 0, 0], sizes = [8, 16, 4], strides = [1, 1, 1]} : vector<10x16x4xf32> to vector<8x16x4xf32>
    %25 = vector.extract_strided_slice %17 {offsets = [0, 0, 0], sizes = [1, 1, 4], strides = [1, 1, 1]} : vector<3x3x4xf32> to vector<1x1x4xf32>
    %26 = vector.shape_cast %25 : vector<1x1x4xf32> to vector<4xf32>
    %27 = vector.shape_cast %26 : vector<4xf32> to vector<1x1x4xf32>
    %28 = vector.broadcast %27 : vector<1x1x4xf32> to vector<8x16x4xf32>
    %29 = arith.mulf %24, %28 : vector<8x16x4xf32>
    %30 = arith.addf %21, %29 : vector<8x16x4xf32>
    %31 = vector.extract_strided_slice %23 {offsets = [1, 0, 0], sizes = [8, 16, 4], strides = [1, 1, 1]} : vector<10x16x4xf32> to vector<8x16x4xf32>
    %32 = vector.extract_strided_slice %17 {offsets = [1, 0, 0], sizes = [1, 1, 4], strides = [1, 1, 1]} : vector<3x3x4xf32> to vector<1x1x4xf32>
    %33 = vector.shape_cast %32 : vector<1x1x4xf32> to vector<4xf32>
    %34 = vector.shape_cast %33 : vector<4xf32> to vector<1x1x4xf32>
    %35 = vector.broadcast %34 : vector<1x1x4xf32> to vector<8x16x4xf32>
    %36 = arith.mulf %31, %35 : vector<8x16x4xf32>
    %37 = arith.addf %30, %36 : vector<8x16x4xf32>
    %38 = vector.extract_strided_slice %23 {offsets = [2, 0, 0], sizes = [8, 16, 4], strides = [1, 1, 1]} : vector<10x16x4xf32> to vector<8x16x4xf32>
    %39 = vector.extract_strided_slice %17 {offsets = [2, 0, 0], sizes = [1, 1, 4], strides = [1, 1, 1]} : vector<3x3x4xf32> to vector<1x1x4xf32>
    %40 = vector.shape_cast %39 : vector<1x1x4xf32> to vector<4xf32>
    %41 = vector.shape_cast %40 : vector<4xf32> to vector<1x1x4xf32>
    %42 = vector.broadcast %41 : vector<1x1x4xf32> to vector<8x16x4xf32>
    %43 = arith.mulf %38, %42 : vector<8x16x4xf32>
    %44 = arith.addf %37, %43 : vector<8x16x4xf32>
    %45 = vector.extract_strided_slice %15 {offsets = [0, 0, 0], sizes = [8, 16, 4], strides = [1, 1, 1]} : vector<10x16x4xf32> to vector<8x16x4xf32>
    %46 = vector.extract_strided_slice %17 {offsets = [0, 1, 0], sizes = [1, 1, 4], strides = [1, 1, 1]} : vector<3x3x4xf32> to vector<1x1x4xf32>
    %47 = vector.shape_cast %46 : vector<1x1x4xf32> to vector<4xf32>
    %48 = vector.shape_cast %47 : vector<4xf32> to vector<1x1x4xf32>
    %49 = vector.broadcast %48 : vector<1x1x4xf32> to vector<8x16x4xf32>
    %50 = arith.mulf %45, %49 : vector<8x16x4xf32>
    %51 = arith.addf %44, %50 : vector<8x16x4xf32>
    %52 = vector.extract_strided_slice %15 {offsets = [1, 0, 0], sizes = [8, 16, 4], strides = [1, 1, 1]} : vector<10x16x4xf32> to vector<8x16x4xf32>
    %53 = vector.extract_strided_slice %17 {offsets = [1, 1, 0], sizes = [1, 1, 4], strides = [1, 1, 1]} : vector<3x3x4xf32> to vector<1x1x4xf32>
    %54 = vector.shape_cast %53 : vector<1x1x4xf32> to vector<4xf32>
    %55 = vector.shape_cast %54 : vector<4xf32> to vector<1x1x4xf32>
    %56 = vector.broadcast %55 : vector<1x1x4xf32> to vector<8x16x4xf32>
    %57 = arith.mulf %52, %56 : vector<8x16x4xf32>
    %58 = arith.addf %51, %57 : vector<8x16x4xf32>
    %59 = vector.extract_strided_slice %15 {offsets = [2, 0, 0], sizes = [8, 16, 4], strides = [1, 1, 1]} : vector<10x16x4xf32> to vector<8x16x4xf32>
    %60 = vector.extract_strided_slice %17 {offsets = [2, 1, 0], sizes = [1, 1, 4], strides = [1, 1, 1]} : vector<3x3x4xf32> to vector<1x1x4xf32>
    %61 = vector.shape_cast %60 : vector<1x1x4xf32> to vector<4xf32>
    %62 = vector.shape_cast %61 : vector<4xf32> to vector<1x1x4xf32>
    %63 = vector.broadcast %62 : vector<1x1x4xf32> to vector<8x16x4xf32>
    %64 = arith.mulf %59, %63 : vector<8x16x4xf32>
    %65 = arith.addf %58, %64 : vector<8x16x4xf32>
    %66 = vector.extract_strided_slice %15 {offsets = [0, 1, 0], sizes = [10, 15, 4], strides = [1, 1, 1]} : vector<10x16x4xf32> to vector<10x15x4xf32>
    %67 = tpu.concatenate %66, %16 in 1 : vector<10x15x4xf32>, vector<10x1x4xf32> -> vector<10x16x4xf32>
    %68 = vector.extract_strided_slice %67 {offsets = [0, 0, 0], sizes = [8, 16, 4], strides = [1, 1, 1]} : vector<10x16x4xf32> to vector<8x16x4xf32>
    %69 = vector.extract_strided_slice %17 {offsets = [0, 2, 0], sizes = [1, 1, 4], strides = [1, 1, 1]} : vector<3x3x4xf32> to vector<1x1x4xf32>
    %70 = vector.shape_cast %69 : vector<1x1x4xf32> to vector<4xf32>
    %71 = vector.shape_cast %70 : vector<4xf32> to vector<1x1x4xf32>
    %72 = vector.broadcast %71 : vector<1x1x4xf32> to vector<8x16x4xf32>
    %73 = arith.mulf %68, %72 : vector<8x16x4xf32>
    %74 = arith.addf %65, %73 : vector<8x16x4xf32>
    %75 = vector.extract_strided_slice %67 {offsets = [1, 0, 0], sizes = [8, 16, 4], strides = [1, 1, 1]} : vector<10x16x4xf32> to vector<8x16x4xf32>
    %76 = vector.extract_strided_slice %17 {offsets = [1, 2, 0], sizes = [1, 1, 4], strides = [1, 1, 1]} : vector<3x3x4xf32> to vector<1x1x4xf32>
    %77 = vector.shape_cast %76 : vector<1x1x4xf32> to vector<4xf32>
    %78 = vector.shape_cast %77 : vector<4xf32> to vector<1x1x4xf32>
    %79 = vector.broadcast %78 : vector<1x1x4xf32> to vector<8x16x4xf32>
    %80 = arith.mulf %75, %79 : vector<8x16x4xf32>
    %81 = arith.addf %74, %80 : vector<8x16x4xf32>
    %82 = vector.extract_strided_slice %67 {offsets = [2, 0, 0], sizes = [8, 16, 4], strides = [1, 1, 1]} : vector<10x16x4xf32> to vector<8x16x4xf32>
    %83 = vector.extract_strided_slice %17 {offsets = [2, 2, 0], sizes = [1, 1, 4], strides = [1, 1, 1]} : vector<3x3x4xf32> to vector<1x1x4xf32>
    %84 = vector.shape_cast %83 : vector<1x1x4xf32> to vector<4xf32>
    %85 = vector.shape_cast %84 : vector<4xf32> to vector<1x1x4xf32>
    %86 = vector.broadcast %85 : vector<1x1x4xf32> to vector<8x16x4xf32>
    %87 = arith.mulf %82, %86 : vector<8x16x4xf32>
    %88 = arith.addf %81, %87 : vector<8x16x4xf32>
    %cst_18 = arith.constant 0.000000e+00 : f32
    %89 = vector.broadcast %cst_18 : f32 to vector<8x16x4xf32>
    %90 = arith.maximumf %88, %89 : vector<8x16x4xf32>
    %91 = vector.shape_cast %90 : vector<8x16x4xf32> to vector<128x4xf32>
    %c0_19 = arith.constant 0 : index
    %c0_20 = arith.constant 0 : index
    %92 = vector.load %arg7[%c0_19, %c0_20] : memref<4x8xf32, #tpu.memory_space<vmem>>, vector<4x8xf32>
    %cst_21 = arith.constant dense<0.000000e+00> : vector<128x8xf32>
    %93 = tpu.matmul %91, %92, %cst_21 {dimension_numbers = #tpu.dot_dimension_numbers<[1], [0], [0], [1], [0, 0, 1, 1], [], []>} : vector<128x4xf32>, vector<4x8xf32>, vector<128x8xf32> -> vector<128x8xf32>
    %c0_22 = arith.constant 0 : index
    %c0_23 = arith.constant 0 : index
    %94 = vector.load %arg8[%c0_22, %c0_23] : memref<1x8xf32, #tpu.memory_space<vmem>>, vector<1x8xf32>
    %95 = vector.broadcast %94 : vector<1x8xf32> to vector<128x8xf32>
    %96 = arith.addf %93, %95 : vector<128x8xf32>
    %cst_24 = arith.constant 0.000000e+00 : f32
    %97 = vector.broadcast %cst_24 : f32 to vector<128x8xf32>
    %98 = arith.maximumf %96, %97 : vector<128x8xf32>
    %99 = vector.shape_cast %98 : vector<128x8xf32> to vector<1x8x16x8xf32>
    %c0_25 = arith.constant 0 : index
    %c0_26 = arith.constant 0 : index
    %c0_27 = arith.constant 0 : index
    %c0_28 = arith.constant 0 : index
    %100 = vector.load %arg10[%c0_25, %c0_26, %c0_27, %c0_28] : memref<1x8x16x8xf32, #tpu.memory_space<vmem>>, vector<1x8x16x8xf32>
    tpu.vector_store %arg10[%c0_25, %c0_26, %c0_27, %c0_28], %99 {strides = array<i32>} : memref<1x8x16x8xf32, #tpu.memory_space<vmem>>, vector<1x8x16x8xf32>,
    return
  }
  func.func @transform_0(%arg0: i32, %arg1: i32) -> (i32, i32, i32, i32) {
    %c8_i32 = arith.constant 8 : i32
    %0 = arith.muli %arg1, %c8_i32 : i32
    %c1_i32 = arith.constant 1 : i32
    %1 = arith.subi %0, %c1_i32 : i32
    %c0_i32 = arith.constant 0 : i32
    %2 = arith.maxsi %1, %c0_i32 : i32
    %c0_i32_0 = arith.constant 0 : i32
    %c0_i32_1 = arith.constant 0 : i32
    %c0_i32_2 = arith.constant 0 : i32
    return %arg0, %2, %c0_i32_0, %c0_i32_1 : i32, i32, i32, i32
  }
  func.func @transform_1(%arg0: i32, %arg1: i32) -> (i32, i32, i32, i32) {
    %c0_i32 = arith.constant 0 : i32
    %c0_i32_0 = arith.constant 0 : i32
    %c0_i32_1 = arith.constant 0 : i32
    return %arg0, %arg1, %c0_i32, %c0_i32_0 : i32, i32, i32, i32
  }
  func.func @transform_2(%arg0: i32, %arg1: i32) -> (i32, i32, i32, i32) {
    %c1_i32 = arith.constant 1 : i32
    %0 = arith.addi %arg1, %c1_i32 : i32
    %c8_i32 = arith.constant 8 : i32
    %1 = arith.muli %0, %c8_i32 : i32
    %c15_i32 = arith.constant 15 : i32
    %2 = arith.minsi %1, %c15_i32 : i32
    %c0_i32 = arith.constant 0 : i32
    %c0_i32_0 = arith.constant 0 : i32
    %c0_i32_1 = arith.constant 0 : i32
    return %arg0, %2, %c0_i32, %c0_i32_0 : i32, i32, i32, i32
  }
  func.func @transform_3(%arg0: i32, %arg1: i32) -> (i32, i32, i32) {
    %c0_i32 = arith.constant 0 : i32
    %c0_i32_0 = arith.constant 0 : i32
    %c0_i32_1 = arith.constant 0 : i32
    %c0_i32_2 = arith.constant 0 : i32
    return %c0_i32, %c0_i32_0, %c0_i32_1 : i32, i32, i32
  }
  func.func @transform_4(%arg0: i32, %arg1: i32) -> (i32, i32) {
    %c0_i32 = arith.constant 0 : i32
    %c0_i32_0 = arith.constant 0 : i32
    %c0_i32_1 = arith.constant 0 : i32
    return %c0_i32, %c0_i32_0 : i32, i32
  }
  func.func @transform_5(%arg0: i32, %arg1: i32) -> (i32, i32) {
    %c0_i32 = arith.constant 0 : i32
    %c0_i32_0 = arith.constant 0 : i32
    %c0_i32_1 = arith.constant 0 : i32
    return %c0_i32, %c0_i32_0 : i32, i32
  }
  func.func @transform_6(%arg0: i32, %arg1: i32) -> (i32, i32) {
    %c0_i32 = arith.constant 0 : i32
    %c0_i32_0 = arith.constant 0 : i32
    %c0_i32_1 = arith.constant 0 : i32
    return %c0_i32, %c0_i32_0 : i32, i32
  }
  func.func @transform_7(%arg0: i32, %arg1: i32) -> (i32, i32) {
    %c0_i32 = arith.constant 0 : i32
    %c0_i32_0 = arith.constant 0 : i32
    %c0_i32_1 = arith.constant 0 : i32
    return %c0_i32, %c0_i32_0 : i32, i32
  }
  func.func @transform_8(%arg0: i32, %arg1: i32) -> (i32, i32, i32, i32) {
    %c0_i32 = arith.constant 0 : i32
    %c0_i32_0 = arith.constant 0 : i32
    %c0_i32_1 = arith.constant 0 : i32
    return %arg0, %arg1, %c0_i32, %c0_i32_0 : i32, i32, i32, i32
  }
}

</mosaic_0001>

<bundles_post_ra>
// kernel: tpu_custom_call.1
= control target key start
LH: loop header
LB: loop body
LE: loop exit
PB: predicated region body
PF: predicated region fallthrough
CT: control target
= control target key end

     0   :  { %s1615_s27 = smov 0   ;;  %s1617_s28 = smov 0   ;;  %s2379_s0 = inlined_call_operand.vmem [shape: f32[2,16,16,4], index: 0, kind: input, shape index: {}]   ;;  %s2380_s1 = inlined_call_operand.vmem [shape: f32[2,16,16,4], index: 1, kind: input, shape index: {}]   ;;  %s2381_s2 = inlined_call_operand.vmem [shape: f32[2,16,16,4], index: 2, kind: input, shape index: {}]   ;;  %s2382_s3 = inlined_call_operand.vmem [shape: f32[3,3,4], index: 3, kind: input, shape index: {}]   ;;  %s2383_s4 = inlined_call_operand.vmem [shape: f32[1,4], index: 4, kind: input, shape index: {}]   ;;  %s2384_s5 = inlined_call_operand.vmem [shape: f32[4,8], index: 5, kind: input, shape index: {}]   ;;  %s2385_s6 = inlined_call_operand.vmem [shape: f32[1,8], index: 6, kind: input, shape index: {}]   ;;  %s2386_s7 = inlined_call_operand.<no memory space> [shape: f32[1,1], index: 7, kind: input, shape index: {}]   ;;  %s2387_s8 = inlined_call_operand.vmem [shape: f32[2,16,16,8], index: 8, kind: output, shape index: {}]  }
   0x1   :  { %s1619_s29 = smov 0   ;;  %s1621_s30 = smov 0  }
   0x2   :  { %s1623_s9 = smov 0  }
   0x3 LB: > { %s28_s7 = sadd.s32 1, %s1560_s29  ;;  %s31_s10 = sadd.s32 1, %s1564_s30  ;;  %s1568_s9 = sphi %s1623_s9, %s19_s9   ;;  %s1564_s30 = sphi %s1621_s30, %s2444_s30   ;;  %s1560_s29 = sphi %s1619_s29, %s2443_s29   ;;  %s1556_s28 = sphi %s1617_s28, %s2442_s28   ;;  %s1552_s27 = sphi %s1615_s27, %s2441_s27  }
   0x4   : > { %p29_p0 = scmp.ge.s32.totalorder %s28_s7, 2  ;;  %p1390_p1 = scmp.ge.s32.totalorder %s1568_s9, 1 }
   0x5   : > { %p349_p2 = scmp.lt.s32.totalorder %s1568_s9, 5 }
   0x6   : > { %s2446_s7 = smov (%p29_p0, %s28_s7), 0  ;;  %s2448_s10 = smov (!%p29_p0, %s31_s10), %s1564_s30 }
   0x7   : > { %p350_p3 = pnand %p1390_p1, %p349_p2  ;;  %p33_p4 = scmp.ge.s32.totalorder %s2448_s10, 2 }
   0x9   : > { %s2450_s10 = smov (%p33_p4, %s2448_s10), 0  ;;  %353 = sbr.rel (%p350_p3) target bundleno = 355 (0x163), region = 52 }
  0x10   : > { %v1000_v0 = vld [vmem:[%s2384_s5] sm:$0xf]  ;;  %vm1057_vm0 = vcmask 1043456   ;;  %s1651_s13 = sshll.u32 %s1552_s27, 3  ;;  %p423_p5 = scmp.lt.s32.totalorder %s1556_s28, 1  ;;  %v599_v1 = vlaneseq  ;;  %vm538_vm1 = vcmask 1040384  }
  0x11   : > { %1488 = vmatprep.subr.msk.mxu1 %vm1057_vm0, %v1000_v0  ;;  %1462 = vmatprep.subr.msk.mxu0 %vm1057_vm0, %v1000_v0  ;;  %p439_p6 = scmp.lt.s32.totalorder %s1651_s13, 15  ;;  %s1658_s16 = sadd.s32 4294967295, %s1651_s13  ;;  %v508_v5 = vld [vmem:[%s2382_s3] sm:$0x7]  ;;  %v509_v6 = vld [vmem:[%s2382_s3 + $0x4] sm:$0x7] }
  0x12   : > { %1489 = vmatpush3.msk.msra.mxu1 %vm1057_vm0, %v1000_v0  ;;  %s2452_s28 = smov (!%p423_p5, %s1556_s28), 1  ;;  %v600_v2 = vshrl.u32 %v599_v1, 7  ;;  %1463 = vmatpush3.msk.msra.mxu0 %vm1057_vm0, %v1000_v0  ;;  %p421_p7 = scmp.gt.s32.totalorder %s1658_s16, 0  ;;  %v510_v7 = vld [vmem:[%s2382_s3 + $0x8] sm:$0x7]  ;;  %vm815_vm2 = vcmask 1046528  }
  0x13   : > { %s440_s14 = scalar_select %p439_p6, %s1651_s13, 15  ;;  %v1722_v23 = vld [vmem:[%s2383_s4] ss:$0 sm:$0xff]  ;;  %vm1008_vm3 = vcmask 31744   ;;  %vm1222_vm4 = vcmask 64512  }
  0x14   : > { %s1655_s15 = sshll.u32 %s2452_s28, 5  ;;  %v601_v3 = vsub.s32 0, %v600_v2  ;;  %v709_v4 = vsub.s32 1, %v600_v2  ;;  %v878_v8 = vsub.s32 2, %v600_v2  ;;  %p1393_p8 = scmp.lt.s32.totalorder %s1658_s16, 15 }
  0x15   : > { %s1402_s17 = sshll.u32 %s440_s14, 1  ;;  %p475_p9 = scmp.lt.s32.totalorder %s1552_s27, 1 }
  0x16   : > { %s1662_s18 = sadd.s32 %s1402_s17, %s1655_s15  ;;  %v1689_v11 = vrot.slane %v508_v5, %v601_v3  ;;  %v1691_v12 = vrot.slane %v509_v6, %v601_v3  ;;  %v1693_v13 = vrot.slane %v510_v7, %v601_v3  ;;  %v1695_v14 = vrot.slane %v508_v5, %v709_v4  ;;  %s1444_s14 = sadd.s32 8, %s1651_s13 }
  0x17   : > { %s1404_s25 = sshll.u32 %s1662_s18, 3  ;;  %v1708_v19 = vrot.slane %v509_v6, %v709_v4  ;;  %v1710_v20 = vrot.slane %v510_v7, %v709_v4  ;;  %v1725_v25 = vrot.slane %v508_v5, %v878_v8  ;;  %v1727_v26 = vrot.slane %v509_v6, %v878_v8  ;;  %p1766_p10 = scmp.lt.s32.totalorder %s1444_s14, 15 }
  0x18   : > { %s1680_s11 = scalar_lea.vmem %s2380_s1, %s1404_s25  ;;  %v1729_v27 = vrot.slane %v510_v7, %v878_v8  ;;  %s2330_s26 = scalar_lea.vmem %s2387_s8, %s1404_s25 }
  0x19   : > { %v1684_v9 = vld [vmem:[%s1680_s11 + $0x30] sm:$0xff]  ;;  %v1687_v10 = vld [vmem:[%s1680_s11 + $0x40] sm:$0xff]  ;;  %s422_s12 = scalar_select %p421_p7, %s1658_s16, 0  ;;  %v1701_v15 = vld [vmem:[%s1680_s11 + $0x38] sm:$0xff] }
  0x1a   : > { %2409 = vst [vmem:[#allocation3_spill] sm:$0xff] %v1684_v9  ;;  %2410 = vst [vmem:[#allocation4_spill] sm:$0xff] %v1687_v10  ;;  %v1704_v16 = vld [vmem:[%s1680_s11 + $0x50] sm:$0xff]  ;;  %v551_v17 = vrot.slane %v1684_v9, 7  ;;  %v554_v18 = vrot.slane %v1687_v10, 7  ;;  %v1714_v21 = vld [vmem:[%s1680_s11 + $0x60] sm:$0xff]  ;;  %v719_v41 = vmul.f32 %v1695_v14, %v1684_v9  ;;  %v755_v52 = vmul.f32 %v1708_v19, %v1687_v10 }
  0x1b   : > { %2411 = vst [vmem:[#allocation5_spill] sm:$0xff] %v1701_v15  ;;  %v1717_v22 = vld [vmem:[%s1680_s11 + $0x70] sm:$0xff]  ;;  %v2396_v24 = vrot.slane %v1704_v16, 7  ;;  %s2454_s12 = smov (!%p1393_p8, %s422_s12), 15  ;;  %v1734_v28 = vld [vmem:[%s1680_s11 + $0x48] sm:$0xff]  ;;  %v2389_v29 = vrot.slane %v1714_v21, 7  ;;  %v723_v49 = vmul.f32 %v1695_v14, %v1704_v16  ;;  %v759_v5 = vmul.f32 %v1708_v19, %v1714_v21 }
  0x1c   : > { %v2388_v30 = vrot.slane %v1717_v22, 7  ;;  %v1741_v31 = vsel %vm538_vm1, 0.0, %v551_v17  ;;  %v1746_v32 = vsel %vm538_vm1, 0.0, %v554_v18  ;;  %s1751_s16 = scalar_select %p475_p9, %s1552_s27, 1  ;;  %v1754_v33 = vld [vmem:[%s1680_s11 + $0x58] sm:$0xff]  ;;  %v552_v34 = vrot.slane %v1701_v15, 7 }
  0x1d   : > { %2412 = vst [vmem:[#allocation6_spill] sm:$0xff] %v1741_v31  ;;  %2413 = vst [vmem:[#allocation7_spill] sm:$0xff] %v1746_v32  ;;  %v595_v35 = vsel %vm538_vm1, 0.0, %v2396_v24  ;;  %v611_v36 = vmul.f32 %v1689_v11, %v1741_v31  ;;  %v647_v37 = vmul.f32 %v1691_v12, %v1746_v32  ;;  %s1398_s20 = sshll.u32 %s2454_s12, 1  ;;  %v1773_v38 = vsel %vm538_vm1, 0.0, %v2389_v29  ;;  %s2456_s14 = smov (!%p1766_p10, %s1444_s14), 15 }
  0x1e   : > { %2415 = vst [vmem:[#allocation8_spill] sm:$0xff] %v1773_v38  ;;  %v1778_v39 = vsel %vm538_vm1, 0.0, %v2388_v30  ;;  %v615_v40 = vmul.f32 %v1689_v11, %v595_v35  ;;  %s429_s22 = sadd.s32 %s1655_s15, %s1398_s20  ;;  %v555_v42 = vrot.slane %v1734_v28, 7  ;;  %v651_v44 = vmul.f32 %v1691_v12, %v1773_v38  ;;  %s477_s24 = scvt.s32.f32 %s1751_s16  ;;  %v1837_v8 = vld [vmem:[%s1680_s11] sm:$0xff] }
  0x1f   : > { %v627_v43 = vadd.f32 %v1722_v23, %v611_v36  ;;  %v683_v45 = vmul.f32 %v1693_v13, %v595_v35  ;;  %s1400_s23 = sshll.u32 %s429_s22, 3  ;;  %v687_v48 = vmul.f32 %v1693_v13, %v1778_v39  ;;  %v1801_v50 = vmul.f32 %v1689_v11, %v1746_v32  ;;  %s2458_s14 = smov (!%p1766_p10, %s2456_s14), 15 }
  0x20   : > { %v631_v47 = vadd.f32 %v1722_v23, %v615_v40  ;;  %s431_s12 = scalar_lea.vmem %s2379_s0, %s1400_s23  ;;  %v828_v53 = vrot.slane %v1684_v9, 1  ;;  %v2395_v56 = vrot.slane %v1701_v15, 1  ;;  %v831_v57 = vrot.slane %v1687_v10, 1  ;;  %s1842_s13 = sshll.u32 %s2458_s14, 1 }
  0x21   : > { %v663_v51 = vadd.f32 %v647_v37, %v627_v43  ;;  %v482_v54 = vld [vmem:[%s431_s12] sm:$0xff]  ;;  %v2392_v58 = vrot.slane %v1734_v28, 1  ;;  %v834_v60 = vrot.slane %v1704_v16, 1  ;;  %v2391_v61 = vrot.slane %v1754_v33, 1  ;;  %v483_v2 = vld [vmem:[%s431_s12 + $0x8] sm:$0xff]  ;;  %s457_s17 = sadd.s32 %s1842_s13, %s1655_s15  ;;  %s478_s14 = ssub.s32 1, %s1552_s27 }
  0x22   : > { %v667_v55 = vadd.f32 %v651_v44, %v631_v47  ;;  %v484_v62 = vstv %s477_s24  ;;  %v1818_v63 = vmul.f32 %v1691_v12, %v595_v35  ;;  %v1823_v1 = vsel %vm815_vm2, %v828_v53, %v2395_v56  ;;  %v1840_v35 = vld [vmem:[%s1680_s11 + $0x10] sm:$0xff]  ;;  %v1852_v43 = vld [vmem:[%s1680_s11 + $0x20] sm:$0xff]  ;;  %p2142_p11 = scmp.lt.s32.totalorder %s478_s14, 1  ;;  %s1411_s19 = sshll.u32 %s457_s17, 3 }
  0x23   : > { %v699_v59 = vadd.f32 %v683_v45, %v663_v51  ;;  %v1825_v3 = vmul.f32 %v484_v62, %v482_v54  ;;  %v791_v6 = vmul.f32 %v1710_v20, %v1704_v16  ;;  %v1834_v7 = vsel %vm815_vm2, %v831_v57, %v2392_v58  ;;  %s459_s16 = scalar_lea.vmem %s2381_s2, %s1411_s19 }
  0x24   : > { %v703_v0 = vadd.f32 %v687_v48, %v667_v55  ;;  %2416 = vst [vmem:[#allocation9_spill] sm:$0xff] %v1834_v7  ;;  %v795_v37 = vmul.f32 %v1710_v20, %v1717_v22  ;;  %v836_v40 = vsel %vm815_vm2, %v834_v60, %v2391_v61  ;;  %v1858_v45 = vmul.f32 %v1725_v25, %v1834_v7  ;;  %v1863_v48 = vld [vmem:[%s1680_s11 + $0x8] sm:$0xff]  ;;  %v1877_v60 = vld [vmem:[%s1680_s11 + $0x18] sm:$0xff]  ;;  %s2460_s14 = smov (!%p2142_p11, %s478_s14), 1 }
  0x25   : > { %v735_v4 = vadd.f32 %v719_v41, %v699_v59  ;;  %v888_v41 = vmul.f32 %v1725_v25, %v1823_v1  ;;  %v1860_v47 = vmul.f32 %v484_v62, %v483_v2  ;;  %v1867_v51 = vmul.f32 %v1725_v25, %v836_v40  ;;  %s481_s20 = scvt.s32.f32 %s2460_s14 }
  0x26   : > { %v739_v36 = vadd.f32 %v723_v49, %v703_v0  ;;  %v2390_v49 = vrot.slane %v1825_v3, 7  ;;  %v924_v53 = vmul.f32 %v1727_v26, %v1834_v7  ;;  %v542_v54 = vrot.slane %v1837_v8, 7 }
  0x27   : > { %v771_v44 = vadd.f32 %v755_v52, %v735_v4  ;;  %v2393_v52 = vrot.slane %v1840_v35, 7  ;;  %v1874_v59 = vmul.f32 %v1727_v26, %v836_v40  ;;  %v2394_v62 = vrot.slane %v1852_v43, 7 }
  0x28   : > { %v775_v55 = vadd.f32 %v759_v5, %v739_v36  ;;  %v960_v0 = vmul.f32 %v1729_v27, %v836_v40  ;;  %v543_v2 = vrot.slane %v1863_v48, 7  ;;  %v589_v4 = vsel %vm538_vm1, 0.0, %v2390_v49 }
  0x29   : > { %v807_v57 = vadd.f32 %v791_v6, %v771_v44  ;;  %v590_v30 = vsel %vm538_vm1, 0.0, %v542_v54  ;;  %v591_v6 = vsel %vm538_vm1, 0.0, %v2393_v52  ;;  %v603_v36 = vmul.f32 %v1689_v11, %v589_v4 }
  0x2a   : > { %v1895_v40 = vsel %vm538_vm1, 0.0, %v2394_v62  ;;  %v605_v49 = vmul.f32 %v1689_v11, %v590_v30  ;;  %v607_v61 = vmul.f32 %v1689_v11, %v591_v6  ;;  %v639_v58 = vmul.f32 %v1691_v12, %v590_v30 }
  0x2b   : > { %v904_v29 = vadd.f32 %v888_v41, %v807_v57  ;;  %v811_v41 = vadd.f32 %v795_v37, %v775_v55  ;;  %v619_v5 = vadd.f32 %v1722_v23, %v603_v36  ;;  %v641_v44 = vmul.f32 %v1691_v12, %v591_v6 }
  0x2c   : > { %v621_v52 = vadd.f32 %v1722_v23, %v605_v49  ;;  %v623_v4 = vadd.f32 %v1722_v23, %v607_v61  ;;  %v643_v62 = vmul.f32 %v1691_v12, %v1895_v40  ;;  %v675_v46 = vmul.f32 %v1693_v13, %v591_v6 }
  0x2d   : > { %v940_v57 = vadd.f32 %v924_v53, %v904_v29  ;;  %v655_v24 = vadd.f32 %v639_v58, %v619_v5  ;;  %v677_v29 = vmul.f32 %v1693_v13, %v1895_v40  ;;  %v679_v30 = vmul.f32 %v1693_v13, %v1741_v31 }
  0x2e   : > { %v657_v37 = vadd.f32 %v641_v44, %v621_v52  ;;  %v659_v53 = vadd.f32 %v643_v62, %v623_v4  ;;  %v711_v61 = vmul.f32 %v1695_v14, %v1825_v3  ;;  %v1914_v55 = vsel %vm538_vm1, %v542_v54, %v543_v2 }
  0x2f   : > { %v976_v56 = vadd.f32 %v960_v0, %v940_v57  ;;  %v691_v36 = vadd.f32 %v675_v46, %v655_v24  ;;  %v713_v58 = vmul.f32 %v1695_v14, %v1837_v8  ;;  %v715_v52 = vmul.f32 %v1695_v14, %v1840_v35 }
  0x30   : > { %v693_v0 = vadd.f32 %v677_v29, %v657_v37  ;;  %v695_v5 = vadd.f32 %v679_v30, %v659_v53  ;;  %v747_v62 = vmul.f32 %v1708_v19, %v1837_v8  ;;  %v751_v24 = vmul.f32 %v1708_v19, %v1852_v43 }
  0x31   : > { %v992_v49 = vmax.f32 %v976_v56, 0.0  ;;  %v727_v6 = vadd.f32 %v711_v61, %v691_v36  ;;  %v749_v56 = vmul.f32 %v1708_v19, %v1840_v35  ;;  %v783_v46 = vmul.f32 %v1710_v20, %v1840_v35 }
  0x32   : > { %v729_v54 = vadd.f32 %v713_v58, %v693_v0  ;;  %v731_v2 = vadd.f32 %v715_v52, %v695_v5  ;;  %v785_v44 = vmul.f32 %v1710_v20, %v1852_v43  ;;  %v787_v57 = vmul.f32 %v1710_v20, %v1684_v9 }
  0x33   : > { %1476 = vmatprep.mubr.msk.f32.mxu1 %vm1008_vm3, %v992_v49  ;;  %v763_v4 = vadd.f32 %v747_v62, %v727_v6  ;;  %v816_v29 = vrot.slane %v1825_v3, 1  ;;  %v817_v37 = vrot.slane %v1860_v47, 1  ;;  %v819_v53 = vrot.slane %v1837_v8, 1 }
  0x34   : > { %v765_v30 = vadd.f32 %v749_v56, %v729_v54  ;;  %v767_v61 = vadd.f32 %v751_v24, %v731_v2  ;;  %v820_v49 = vrot.slane %v1863_v48, 1  ;;  %v822_v36 = vrot.slane %v1840_v35, 1 }
  0x35   : > { %v799_v58 = vadd.f32 %v783_v46, %v763_v4  ;;  %v818_v0 = vsel %vm815_vm2, %v816_v29, %v817_v37  ;;  %v823_v5 = vrot.slane %v1877_v60, 1  ;;  %v1945_v52 = vsel %vm538_vm1, %v551_v17, %v552_v34 }
  0x36   : > { %2417 = vst [vmem:[#allocation10_spill] sm:$0xff] %v1945_v52  ;;  %v801_v62 = vadd.f32 %v785_v44, %v765_v30  ;;  %v803_v8 = vadd.f32 %v787_v57, %v767_v61  ;;  %v821_v6 = vsel %vm815_vm2, %v819_v53, %v820_v49  ;;  %v880_v56 = vmul.f32 %v1725_v25, %v818_v0 }
  0x37   : > { %v824_v24 = vsel %vm815_vm2, %v822_v36, %v823_v5  ;;  %v882_v46 = vmul.f32 %v1725_v25, %v821_v6  ;;  %v916_v54 = vmul.f32 %v1727_v26, %v821_v6  ;;  %v1957_v2 = vsel %vm538_vm1, %v554_v18, %v555_v42 }
  0x38   : > { %v1960_v17 = vadd.f32 %v1867_v51, %v811_v41  ;;  %v884_v34 = vmul.f32 %v1725_v25, %v824_v24  ;;  %v896_v44 = vadd.f32 %v880_v56, %v799_v58  ;;  %v952_v57 = vmul.f32 %v1729_v27, %v824_v24 }
  0x39   : > { %v1966_v4 = vmul.f32 %v1689_v11, %v1914_v55  ;;  %v2418_v29 = vrot.slane %v1754_v33, 7  ;;  %v2419_v53 = vrot.slane %v1704_v16, 7  ;;  %v612_v18 = vmul.f32 %v1689_v11, %v1945_v52 }
  0x3a   : > { %v648_v42 = vmul.f32 %v1691_v12, %v1957_v2  ;;  %v1981_v51 = vmul.f32 %v1695_v14, %v1863_v48  ;;  %v898_v41 = vadd.f32 %v882_v46, %v801_v62  ;;  %v918_v61 = vmul.f32 %v1727_v26, %v824_v24 }
  0x3b   : > { %v1973_v30 = vsel %vm538_vm1, %v2419_v53, %v2418_v29  ;;  %v932_v36 = vadd.f32 %v916_v54, %v896_v44  ;;  %v1984_v58 = vadd.f32 %v884_v34, %v803_v8  ;;  %v628_v0 = vadd.f32 %v1722_v23, %v612_v18 }
  0x3c   : > { %v684_v6 = vmul.f32 %v1693_v13, %v1973_v30  ;;  %v720_v56 = vmul.f32 %v1695_v14, %v1701_v15  ;;  %v2420_v53 = vrot.slane %v1701_v15, 1  ;;  %v2422_v62 = vrot.slane %v1734_v28, 1 }
  0x3d   : > { %v968_v29 = vadd.f32 %v952_v57, %v932_v36  ;;  %v2423_v8 = vrot.slane %v1754_v33, 1  ;;  %v664_v54 = vadd.f32 %v648_v42, %v628_v0  ;;  %v756_v34 = vmul.f32 %v1708_v19, %v1734_v28 }
  0x3e   : > { %v1994_v7 = vsel %vm815_vm2, %v2420_v53, 0.0  ;;  %v1999_v24 = vsel %vm815_vm2, %v2422_v62, 0.0  ;;  %v792_v44 = vmul.f32 %v1710_v20, %v1754_v33  ;;  %v2424_v57 = vrot.slane %v1860_v47, 7 }
  0x3f   : > { %2421 = vst [vmem:[#allocation11_spill] sm:$0xff] %v1994_v7  ;;  %v2004_v46 = vsel %vm815_vm2, %v2423_v8, 0.0  ;;  %v2425_v18 = vrot.slane %v1825_v3, 7  ;;  %v984_v53 = vmax.f32 %v968_v29, 0.0  ;;  %v2426_v62 = vrot.slane %v1877_v60, 7 }
  0x40   : > { %v2427_v9 = vrot.slane %v1840_v35, 7  ;;  %v640_v0 = vmul.f32 %v1691_v12, %v1914_v55  ;;  %v700_v32 = vadd.f32 %v684_v6, %v664_v54  ;;  %v889_v31 = vmul.f32 %v1725_v25, %v1994_v7  ;;  %v2064_v7 = vld [vmem:[%s1680_s11 + $0x28] sm:$0xff] }
  0x41   : > { %v541_v36 = vsel %vm538_vm1, %v2425_v18, %v2424_v57  ;;  %v925_v3 = vmul.f32 %v1727_v26, %v1999_v24  ;;  %v961_v29 = vmul.f32 %v1729_v27, %v2004_v46  ;;  %1464 = vmatprep.mubr.msk.f32.mxu0 %vm1008_vm3, %v984_v53  ;;  %v712_v55 = vmul.f32 %v1695_v14, %v1860_v47 }
  0x42   : > { %v2020_v8 = vsel %vm538_vm1, %v2427_v9, %v2426_v62  ;;  %v604_v42 = vmul.f32 %v1689_v11, %v541_v36  ;;  %v866_v6 = vsel %vm815_vm2, %v817_v37, 0.0  ;;  %v736_v54 = vadd.f32 %v720_v56, %v700_v32  ;;  %v2054_v56 = vld [vmem:[%s1680_s11 + $0x68] sm:$0xff] }
  0x43   : > { %v676_v35 = vmul.f32 %v1693_v13, %v2020_v8  ;;  %v748_v57 = vmul.f32 %v1708_v19, %v1863_v48  ;;  %v784_v18 = vmul.f32 %v1710_v20, %v1877_v60  ;;  %v2043_v36 = vsel %vm815_vm2, %v820_v49, 0.0 }
  0x44   : > { %v620_v9 = vadd.f32 %v1722_v23, %v604_v42  ;;  %v2046_v62 = vsel %vm815_vm2, %v823_v5, 0.0  ;;  %v629_v47 = vadd.f32 %v1722_v23, %v1801_v50  ;;  %v685_v32 = vmul.f32 %v1693_v13, %v1773_v38 }
  0x45   : > { %v772_v37 = vadd.f32 %v756_v34, %v736_v54  ;;  %v881_v48 = vmul.f32 %v1725_v25, %v866_v6  ;;  %v721_v42 = vmul.f32 %v1695_v14, %v1687_v10  ;;  %v757_v49 = vmul.f32 %v1708_v19, %v1704_v16 }
  0x46   : > { %v656_v53 = vadd.f32 %v640_v0, %v620_v9  ;;  %v665_v5 = vadd.f32 %v1818_v63, %v629_v47  ;;  %v837_v9 = vrot.slane %v1714_v21, 1  ;;  %v838_v50 = vrot.slane %v2054_v56, 1 }
  0x47   : > { %v808_v34 = vadd.f32 %v792_v44, %v772_v37  ;;  %v793_v6 = vmul.f32 %v1710_v20, %v1714_v21  ;;  %v825_v54 = vrot.slane %v1852_v43, 1  ;;  %v826_v10 = vrot.slane %v2064_v7, 1 }
  0x48   : > { %v692_v0 = vadd.f32 %v676_v35, %v656_v53  ;;  %v701_v38 = vadd.f32 %v685_v32, %v665_v5  ;;  %v934_v16 = vadd.f32 %v918_v61, %v898_v41  ;;  %v561_v35 = vrot.slane %v2054_v56, 7 }
  0x49   : > { %v905_v63 = vadd.f32 %v889_v31, %v808_v34  ;;  %v2072_v53 = vsel %vm815_vm2, %v837_v9, %v838_v50  ;;  %v2077_v44 = vsel %vm815_vm2, %v825_v54, %v826_v10  ;;  %v614_v47 = vmul.f32 %v1689_v11, %v1957_v2 }
  0x4a   : > { %v728_v15 = vadd.f32 %v712_v55, %v692_v0  ;;  %v737_v52 = vadd.f32 %v721_v42, %v701_v38  ;;  %v954_v55 = vmul.f32 %v1729_v27, %v2077_v44  ;;  %v2428_v41 = vrot.slane %v1714_v21, 7 }
  0x4b   : > { %v941_v61 = vadd.f32 %v925_v3, %v905_v63  ;;  %v630_v32 = vadd.f32 %v1722_v23, %v614_v47  ;;  %v650_v0 = vmul.f32 %v1691_v12, %v1973_v30  ;;  %v953_v34 = vmul.f32 %v1729_v27, %v2046_v62 }
  0x4c   : > { %v764_v37 = vadd.f32 %v748_v57, %v728_v15  ;;  %v2086_v31 = vsel %vm538_vm1, %v2428_v41, %v561_v35  ;;  %v917_v15 = vmul.f32 %v1727_v26, %v2043_v36  ;;  %v773_v38 = vadd.f32 %v757_v49, %v737_v52 }
  0x4d   : > { %v686_v5 = vmul.f32 %v1693_v13, %v2086_v31  ;;  %v970_v57 = vadd.f32 %v954_v55, %v934_v16  ;;  %v977_v42 = vadd.f32 %v961_v29, %v941_v61  ;;  %v666_v54 = vadd.f32 %v650_v0, %v630_v32 }
  0x4e   : > { %v800_v9 = vadd.f32 %v784_v18, %v764_v37  ;;  %v722_v3 = vmul.f32 %v1695_v14, %v1734_v28  ;;  %v809_v63 = vadd.f32 %v793_v6, %v773_v38  ;;  %v962_v47 = vmul.f32 %v1729_v27, %v2072_v53  ;;  %v2126_v38 = vld [vmem:[%s1680_s11 + $0x78] sm:$0xff] }
  0x4f   : > { %v758_v18 = vmul.f32 %v1708_v19, %v1754_v33  ;;  %v993_v37 = vmax.f32 %v977_v42, 0.0  ;;  %v986_v41 = vmax.f32 %v970_v57, 0.0  ;;  %v702_v52 = vadd.f32 %v686_v5, %v666_v54 }
  0x50   : > { %v897_v35 = vadd.f32 %v881_v48, %v800_v9  ;;  %v794_v29 = vmul.f32 %v1710_v20, %v2054_v56  ;;  %v906_v16 = vadd.f32 %v1858_v45, %v809_v63  ;;  %v2107_v48 = vsel %vm815_vm2, %v838_v50, 0.0 }
  0x51   : > { %v549_v6 = vrot.slane %v2064_v7, 7  ;;  %1477 = vmatmul.mubr.msk.f32.vlgmr.msra.gmra.mrb[0].mxu1 %vm1008_vm3, %v993_v37  ;;  %v738_v55 = vadd.f32 %v722_v3, %v702_v52  ;;  %v891_v61 = vmul.f32 %v1725_v25, %v1999_v24  ;;  %v622_v32 = vadd.f32 %v1722_v23, %v1966_v4 }
  0x52   : > { %v933_v49 = vadd.f32 %v917_v15, %v897_v35  ;;  %v642_v0 = vmul.f32 %v1691_v12, %v2020_v8  ;;  %v942_v45 = vadd.f32 %v1874_v59, %v906_v16  ;;  %v927_v50 = vmul.f32 %v1727_v26, %v2004_v46 }
  0x53   : > { %v2429_v9 = vrot.slane %v1852_v43, 7  ;;  %v774_v57 = vadd.f32 %v758_v18, %v738_v55  ;;  %v963_v4 = vmul.f32 %v1729_v27, %v2107_v48  ;;  %v750_v3 = vmul.f32 %v1708_v19, %v1877_v60 }
  0x54   : > { %v969_v5 = vadd.f32 %v953_v34, %v933_v49  ;;  %v658_v42 = vadd.f32 %v642_v0, %v622_v32  ;;  %v978_v54 = vadd.f32 %v962_v47, %v942_v45  ;;  %v786_v35 = vmul.f32 %v1710_v20, %v2064_v7 }
  0x55   : > { %v2123_v15 = vsel %vm538_vm1, %v2429_v9, %v549_v6  ;;  %v810_v63 = vadd.f32 %v794_v29, %v774_v57  ;;  %v883_v18 = vmul.f32 %v1725_v25, %v2043_v36  ;;  %v564_v52 = vrot.slane %v2126_v38, 7 }
  0x56   : > { %v678_v59 = vmul.f32 %v1693_v13, %v2123_v15  ;;  %v985_v34 = vmax.f32 %v969_v5, 0.0  ;;  %v994_v47 = vmax.f32 %v978_v54, 0.0  ;;  %v840_v49 = vrot.slane %v1717_v22, 1 }
  0x57   : > { %v841_v16 = vrot.slane %v2126_v38, 1  ;;  %v928_v29 = vmul.f32 %v1727_v26, %v2072_v53  ;;  %v907_v36 = vadd.f32 %v891_v61, %v810_v63  ;;  %v920_v55 = vmul.f32 %v1727_v26, %v2077_v44 }
  0x58   : > { %v694_v37 = vadd.f32 %v678_v59, %v658_v42  ;;  %1465 = vmatmul.mubr.msk.f32.vlgmr.msra.gmra.mrb[0].mxu0 %vm1008_vm3, %v985_v34  ;;  %v956_v32 = vmul.f32 %v1729_v27, %v1823_v1  ;;  %1479 = vmatprep.mubr.msk.f32.mxu1 %vm1008_vm3, %v994_v47  ;;  %v919_v54 = vmul.f32 %v1727_v26, %v2046_v62 }
  0x59   : > { %1467 = vmatprep.mubr.msk.f32.mxu0 %vm1008_vm3, %v986_v41  ;;  %v2159_v0 = vsel %vm815_vm2, %v840_v49, %v841_v16  ;;  %v944_v5 = vadd.f32 %v928_v29, %v1960_v17  ;;  %v2431_v41 = vrot.slane %v1717_v22, 7  ;;  %v943_v45 = vadd.f32 %v927_v50, %v907_v36 }
  0x5a   : > { %v730_v6 = vadd.f32 %v1981_v51, %v694_v37  ;;  %v616_v51 = vmul.f32 %v1689_v11, %v1973_v30  ;;  %v964_v57 = vmul.f32 %v1729_v27, %v2159_v0  ;;  %v936_v42 = vadd.f32 %v920_v55, %v1984_v58 }
  0x5b   : > { %v2165_v61 = vsel %vm538_vm1, %v2431_v41, %v564_v52  ;;  %v2181_v17 = vsel %vm815_vm2, %v826_v10, 0.0  ;;  %v652_v30 = vmul.f32 %v1691_v12, %v2086_v31  ;;  %v979_v58 = vadd.f32 %v963_v4, %v943_v45 }
  0x5c   : > { %v766_v9 = vadd.f32 %v750_v3, %v730_v6  ;;  %v632_v59 = vadd.f32 %v1722_v23, %v616_v51  ;;  %v688_v50 = vmul.f32 %v1693_v13, %v2165_v61  ;;  %v980_v3 = vadd.f32 %v964_v57, %v944_v5 }
  0x5d   : > { %v972_v63 = vadd.f32 %v956_v32, %v936_v42  ;;  %v724_v37 = vmul.f32 %v1695_v14, %v1754_v33  ;;  %v995_v52 = vmax.f32 %v979_v58, 0.0  ;;  %v955_v49 = vmul.f32 %v1729_v27, %v2181_v17  ;;  %v2433_v58 = vld [vmem:[#allocation8_spill] sm:$0xff] }
  0x5e   : > { %v802_v34 = vadd.f32 %v786_v35, %v766_v9  ;;  %v668_v10 = vadd.f32 %v652_v30, %v632_v59  ;;  %v996_v29 = vmax.f32 %v980_v3, 0.0  ;;  %v653_v4 = vmul.f32 %v1691_v12, %v1778_v39  ;;  %v2432_v9 = vld [vmem:[#allocation10_spill] sm:$0xff]  ;;  %v488_v30 = vld [vmem:[%s459_s16 + $0x8] sm:$0xff] }
  0x5f   : > { %v760_v36 = vmul.f32 %v1708_v19, %v2054_v56  ;;  %v609_v33 = vmul.f32 %v1689_v11, %v1895_v40  ;;  %1480 = vmatmul.mubr.msk.f32.gmra.mrb[2].mxu1 %vm1008_vm3, %v995_v52  ;;  %v608_v6 = vmul.f32 %v1689_v11, %v2020_v8  ;;  %v644_v55 = vmul.f32 %v1691_v12, %v2123_v15  ;;  %v487_v40 = vld [vmem:[%s459_s16] sm:$0xff] }
  0x60   : > { %v899_v47 = vadd.f32 %v883_v18, %v802_v34  ;;  %v704_v35 = vadd.f32 %v688_v50, %v668_v10  ;;  %1482 = vmatprep.mubr.msk.f32.mxu1 %vm1008_vm3, %v996_v29  ;;  %v988_v39 = vmax.f32 %v972_v63, 0.0  ;;  %v796_v5 = vmul.f32 %v1710_v20, %v2126_v38 }
  0x61   : > { %v2216_v41 = vsel %vm815_vm2, %v841_v16, 0.0  ;;  %v893_v45 = vmul.f32 %v1725_v25, %v2004_v46  ;;  %v624_v8 = vadd.f32 %v1722_v23, %v608_v6  ;;  %v680_v57 = vmul.f32 %v1693_v13, %v2432_v9 }
  0x62   : > { %v935_v18 = vadd.f32 %v919_v54, %v899_v47  ;;  %v740_v32 = vadd.f32 %v724_v37, %v704_v35  ;;  %v929_v59 = vmul.f32 %v1727_v26, %v2107_v48  ;;  %v489_v50 = vstv %s481_s20 }
  0x63   : > { %v617_v16 = vmul.f32 %v1689_v11, %v2433_v58  ;;  %v660_v54 = vadd.f32 %v644_v55, %v624_v8  ;;  %v716_v3 = vmul.f32 %v1695_v14, %v1877_v60  ;;  %v490_v46 = vmul.f32 %v489_v50, %v487_v40 }
  0x64   : > { %v971_v51 = vadd.f32 %v955_v49, %v935_v18  ;;  %v776_v42 = vadd.f32 %v760_v36, %v740_v32  ;;  %v965_v10 = vmul.f32 %v1729_v27, %v2216_v41  ;;  %v752_v37 = vmul.f32 %v1708_v19, %v2064_v7  ;;  %v2434_v49 = vld [vmem:[#allocation5_spill] sm:$0xff] }
  0x65   : > { %v633_v52 = vadd.f32 %v1722_v23, %v617_v16  ;;  %v696_v47 = vadd.f32 %v680_v57, %v660_v54  ;;  %v788_v29 = vmul.f32 %v1710_v20, %v2434_v49  ;;  %v2237_v35 = vmul.f32 %v489_v50, %v488_v30  ;;  %v2435_v30 = vld [vmem:[#allocation6_spill] sm:$0xff]  ;;  %v2436_v50 = vld [vmem:[#allocation7_spill] sm:$0xff] }
  0x66   : > { %v987_v34 = vmax.f32 %v971_v51, 0.0  ;;  %v812_v63 = vadd.f32 %v796_v5, %v776_v42  ;;  %v566_v36 = vrot.slane %v490_v46, 7  ;;  %v885_v18 = vmul.f32 %v1725_v25, %v2046_v62 }
  0x67   : > { %v921_v6 = vmul.f32 %v1727_v26, %v2181_v17  ;;  %v669_v55 = vadd.f32 %v653_v4, %v633_v52  ;;  %v732_v32 = vadd.f32 %v716_v3, %v696_v47  ;;  %v725_v40 = vmul.f32 %v1695_v14, %v1714_v21 }
  0x68   : > { %1468 = vmatmul.mubr.msk.f32.gmra.mrb[2].mxu0 %vm1008_vm3, %v987_v34  ;;  %v909_v60 = vadd.f32 %v893_v45, %v812_v63  ;;  %v598_v5 = vsel %vm538_vm1, 0.0, %v566_v36  ;;  %v843_v51 = vrot.slane %v490_v46, 1  ;;  %v625_v45 = vadd.f32 %v1722_v23, %v609_v33  ;;  %v2437_v34 = vld [vmem:[#allocation11_spill] sm:$0xff] }
  0x69   : > { %1470 = vmatprep.mubr.msk.f32.mxu0 %vm1008_vm3, %v988_v39  ;;  %v689_v57 = vmul.f32 %v1693_v13, %v598_v5  ;;  %v844_v39 = vrot.slane %v2237_v35, 1  ;;  %v768_v42 = vadd.f32 %v752_v37, %v732_v32  ;;  %v567_v62 = vrot.slane %v2237_v35, 7  ;;  %v2438_v32 = vld [vmem:[#allocation3_spill] sm:$0xff] }
  0x6a   : > { %v945_v8 = vadd.f32 %v929_v59, %v909_v60  ;;  %v645_v4 = vmul.f32 %v1691_v12, %v2435_v30  ;;  %v681_v58 = vmul.f32 %v1693_v13, %v2436_v50  ;;  %v957_v21 = vmul.f32 %v1729_v27, %v2437_v34 }
  0x6b   : > { %v705_v59 = vadd.f32 %v689_v57, %v669_v55  ;;  %v761_v54 = vmul.f32 %v1708_v19, %v1717_v22  ;;  %v804_v3 = vadd.f32 %v788_v29, %v768_v42  ;;  %v797_v33 = vmul.f32 %v1710_v20, %v490_v46  ;;  %v2439_v29 = vld [vmem:[#allocation4_spill] sm:$0xff] }
  0x6c   : > { %v981_v16 = vadd.f32 %v965_v10, %v945_v8  ;;  %v661_v63 = vadd.f32 %v645_v4, %v625_v45  ;;  %v717_v37 = vmul.f32 %v1695_v14, %v1852_v43  ;;  %v845_v60 = vsel %vm815_vm2, %v843_v51, %v844_v39 }
  0x6d   : > { %v741_v47 = vadd.f32 %v725_v40, %v705_v59  ;;  %v753_v10 = vmul.f32 %v1708_v19, %v2438_v32  ;;  %v901_v5 = vadd.f32 %v885_v18, %v804_v3  ;;  %v568_v55 = vsel %vm538_vm1, %v566_v36, %v567_v62 }
  0x6e   : > { %v997_v52 = vmax.f32 %v981_v16, 0.0  ;;  %v697_v8 = vadd.f32 %v681_v58, %v661_v63  ;;  %v618_v22 = vmul.f32 %v1689_v11, %v2086_v31  ;;  %v894_v43 = vmul.f32 %v1725_v25, %v2072_v53  ;;  %v2440_v63 = vld [vmem:[#allocation9_spill] sm:$0xff] }
  0x6f   : > { %v777_v46 = vadd.f32 %v761_v54, %v741_v47  ;;  %v789_v40 = vmul.f32 %v1710_v20, %v2439_v29  ;;  %v654_v51 = vmul.f32 %v1691_v12, %v2165_v61  ;;  %v937_v57 = vadd.f32 %v921_v6, %v901_v5 }
  0x70   : > { %1483 = vmatmul.mubr.msk.f32.gmra.mrb[4].mxu1 %vm1008_vm3, %v997_v52  ;;  %v733_v18 = vadd.f32 %v717_v37, %v697_v8  ;;  %v634_v45 = vadd.f32 %v1722_v23, %v618_v22  ;;  %v690_v36 = vmul.f32 %v1693_v13, %v568_v55  ;;  %v930_v31 = vmul.f32 %v1727_v26, %v2159_v0 }
  0x71   : > { %v813_v42 = vadd.f32 %v797_v33, %v777_v46  ;;  %v966_v62 = vmul.f32 %v1729_v27, %v845_v60  ;;  %v886_v53 = vmul.f32 %v1725_v25, %v2077_v44  ;;  %v973_v30 = vadd.f32 %v957_v21, %v937_v57 }
  0x72   : > { %v769_v4 = vadd.f32 %v753_v10, %v733_v18  ;;  %v670_v50 = vadd.f32 %v654_v51, %v634_v45  ;;  %v726_v61 = vmul.f32 %v1695_v14, %v2054_v56  ;;  %v922_v58 = vmul.f32 %v1727_v26, %v1823_v1 }
  0x73   : > { %v910_v6 = vadd.f32 %v894_v43, %v813_v42  ;;  %v610_v16 = vmul.f32 %v1689_v11, %v2123_v15  ;;  %v646_v0 = vmul.f32 %v1691_v12, %v2432_v9  ;;  %v989_v59 = vmax.f32 %v973_v30, 0.0 }
  0x74   : > { %v805_v54 = vadd.f32 %v789_v40, %v769_v4  ;;  %v706_v3 = vadd.f32 %v690_v36, %v670_v50  ;;  %v762_v44 = vmul.f32 %v1708_v19, %v2126_v38  ;;  %v682_v56 = vmul.f32 %v1693_v13, %v1957_v2 }
  0x75   : > { %v946_v21 = vadd.f32 %v930_v31, %v910_v6  ;;  %v626_v33 = vadd.f32 %v1722_v23, %v610_v16  ;;  %1471 = vmatmul.mubr.msk.f32.gmra.mrb[4].mxu0 %vm1008_vm3, %v989_v59  ;;  %v958_v11 = vmul.f32 %v1729_v27, %v2440_v63  ;;  %v798_v12 = vmul.f32 %v1710_v20, %v2237_v35 }
  0x76   : > { %v902_v1 = vadd.f32 %v886_v53, %v805_v54  ;;  %v742_v15 = vadd.f32 %v726_v61, %v706_v3  ;;  %v718_v38 = vmul.f32 %v1695_v14, %v2064_v7  ;;  %v895_v13 = vmul.f32 %v1725_v25, %v2107_v48 }
  0x77   : > { %v982_v9 = vadd.f32 %v966_v62, %v946_v21  ;;  %v662_v37 = vadd.f32 %v646_v0, %v626_v33  ;;  %v875_v47 = vsel %vm815_vm2, %v844_v39, 0.0  ;;  %v754_v32 = vmul.f32 %v1708_v19, %v2434_v49 }
  0x78   : > { %v938_v52 = vadd.f32 %v922_v58, %v902_v1  ;;  %v778_v23 = vadd.f32 %v762_v44, %v742_v15  ;;  %v931_v35 = vmul.f32 %v1727_v26, %v2216_v41  ;;  %v790_v7 = vmul.f32 %v1710_v20, %v1734_v28 }
  0x79   : > { %v998_v2 = vmax.f32 %v982_v9, 0.0  ;;  %v698_v60 = vadd.f32 %v682_v56, %v662_v37  ;;  %v967_v55 = vmul.f32 %v1729_v27, %v875_v47  ;;  %v887_v22 = vmul.f32 %v1725_v25, %v2181_v17  ;;  %v1417_v25 = vld [vmem:[%s2385_s6] ss:$0 sm:$0xff] }
  0x7a   : > { %v974_v10 = vadd.f32 %v958_v11, %v938_v52  ;;  %v814_v5 = vadd.f32 %v798_v12, %v778_v23  ;;  %v923_v41 = vmul.f32 %v1727_v26, %v2437_v34  ;;  %v959_v20 = vmul.f32 %v1729_v27, %v1999_v24 }
  0x7b   : > { %1485 = vmatprep.mubr.msk.f32.mxu1 %vm1008_vm3, %v998_v2  ;;  %v734_v14 = vadd.f32 %v718_v38, %v698_v60 }
  0x7c   : > { %v990_v8 = vmax.f32 %v974_v10, 0.0  ;;  %v911_v48 = vadd.f32 %v895_v13, %v814_v5 }
  0x7d   : > { %v770_v39 = vadd.f32 %v754_v32, %v734_v14 }
  0x7e   : > { %1473 = vmatprep.mubr.msk.f32.mxu0 %vm1008_vm3, %v990_v8  ;;  %v947_v19 = vadd.f32 %v931_v35, %v911_v48 }
  0x7f   : > { %v806_v49 = vadd.f32 %v790_v7, %v770_v39 }
  0x80   : > { %v983_v46 = vadd.f32 %v967_v55, %v947_v19 }
  0x81   : > { %v903_v43 = vadd.f32 %v887_v22, %v806_v49 }
  0x82   : > { %v999_v28 = vmax.f32 %v983_v46, 0.0 }
  0x83   : > { %v939_v29 = vadd.f32 %v923_v41, %v903_v43 }
  0x84   : > { %1486 = vmatmul.mubr.msk.f32.gmra.mrb[6].mxu1 %vm1008_vm3, %v999_v28 }
  0x85   : > { %v975_v40 = vadd.f32 %v959_v20, %v939_v29 }
  0x87   : > { %v991_v51 = vmax.f32 %v975_v40, 0.0 }
  0x89   : > { %1474 = vmatmul.mubr.msk.f32.gmra.mrb[6].mxu0 %vm1008_vm3, %v991_v51 }
 0x124   : > { %v1478_v17 = vpop.f32.mrb[0].mxu1 }
 0x125   : > { %v1173_v57 = vadd.f32 %v1478_v17, %v1417_v25  ;;  %v1167_v26 = vpop.f32.mrb[1].mxu1 }
 0x126   : > { %v1168_v27 = vadd.f32 %v1417_v25, %v1167_v26 }
 0x127   : > { %v1215_v24 = vmax.f32 %v1173_v57, 0.0 }
 0x128   : > { %v1214_v34 = vmax.f32 %v1168_v27, 0.0 }
 0x129   : > { %1232 = vst.msk [vmem:[%s2330_s26 + $0x48] sm:$0xff] %vm1222_vm4, %v1215_v24 }
 0x12a   : > { %1231 = vst.msk [vmem:[%s2330_s26 + $0x40] sm:$0xff] %vm1222_vm4, %v1214_v34 }
 0x12b   : > { %v1466_v18 = vpop.f32.mrb[0].mxu0 }
 0x12c   : > { %v1133_v45 = vadd.f32 %v1466_v18, %v1417_v25  ;;  %v1127_v36 = vpop.f32.mrb[1].mxu0 }
 0x12d   : > { %v1128_v42 = vadd.f32 %v1417_v25, %v1127_v36 }
 0x12e   : > { %v1207_v31 = vmax.f32 %v1133_v45, 0.0 }
 0x12f   : > { %v1206_v62 = vmax.f32 %v1128_v42, 0.0 }
 0x130   : > { %1224 = vst.msk [vmem:[%s2330_s26 + $0x8] sm:$0xff] %vm1222_vm4, %v1207_v31 }
 0x131   : > { %1223 = vst.msk [vmem:[%s2330_s26] sm:$0xff] %vm1222_vm4, %v1206_v62 }
 0x132   : > { %v1481_v53 = vpop.f32.mrb[2].mxu1 }
 0x133   : > { %v1183_v30 = vadd.f32 %v1481_v53, %v1417_v25  ;;  %v1177_v4 = vpop.f32.mrb[3].mxu1 }
 0x134   : > { %v1178_v50 = vadd.f32 %v1417_v25, %v1177_v4 }
 0x135   : > { %v1217_v61 = vmax.f32 %v1183_v30, 0.0 }
 0x136   : > { %v1216_v6 = vmax.f32 %v1178_v50, 0.0 }
 0x137   : > { %1234 = vst.msk [vmem:[%s2330_s26 + $0x58] sm:$0xff] %vm1222_vm4, %v1217_v61 }
 0x138   : > { %1233 = vst.msk [vmem:[%s2330_s26 + $0x50] sm:$0xff] %vm1222_vm4, %v1216_v6 }
 0x13b   : > { %v1469_v58 = vpop.f32.mrb[2].mxu0 }
 0x13c   : > { %v1143_v16 = vadd.f32 %v1469_v58, %v1417_v25  ;;  %v1137_v0 = vpop.f32.mrb[3].mxu0 }
 0x13d   : > { %v1138_v59 = vadd.f32 %v1417_v25, %v1137_v0 }
 0x13e   : > { %v1209_v54 = vmax.f32 %v1143_v16, 0.0 }
 0x13f   : > { %v1208_v3 = vmax.f32 %v1138_v59, 0.0 }
 0x140   : > { %1226 = vst.msk [vmem:[%s2330_s26 + $0x18] sm:$0xff] %vm1222_vm4, %v1209_v54 }
 0x141   : > { %1225 = vst.msk [vmem:[%s2330_s26 + $0x10] sm:$0xff] %vm1222_vm4, %v1208_v3 }
 0x143   : > { %v1484_v44 = vpop.f32.mrb[4].mxu1 }
 0x144   : > { %v1193_v21 = vadd.f32 %v1484_v44, %v1417_v25  ;;  %v1187_v33 = vpop.f32.mrb[5].mxu1 }
 0x145   : > { %v1188_v56 = vadd.f32 %v1417_v25, %v1187_v33 }
 0x146   : > { %v1219_v1 = vmax.f32 %v1193_v21, 0.0 }
 0x147   : > { %v1218_v63 = vmax.f32 %v1188_v56, 0.0 }
 0x148   : > { %1236 = vst.msk [vmem:[%s2330_s26 + $0x68] sm:$0xff] %vm1222_vm4, %v1219_v1  ;;  %v1472_v11 = vpop.f32.mrb[4].mxu0 }
 0x149   : > { %1235 = vst.msk [vmem:[%s2330_s26 + $0x60] sm:$0xff] %vm1222_vm4, %v1218_v63  ;;  %v1153_v15 = vadd.f32 %v1472_v11, %v1417_v25  ;;  %v1147_v12 = vpop.f32.mrb[5].mxu0 }
 0x14a   : > { %v1148_v9 = vadd.f32 %v1417_v25, %v1147_v12 }
 0x14b   : > { %v1211_v37 = vmax.f32 %v1153_v15, 0.0 }
 0x14c   : > { %v1210_v38 = vmax.f32 %v1148_v9, 0.0 }
 0x14d   : > { %1228 = vst.msk [vmem:[%s2330_s26 + $0x28] sm:$0xff] %vm1222_vm4, %v1211_v37 }
 0x14e   : > { %1227 = vst.msk [vmem:[%s2330_s26 + $0x20] sm:$0xff] %vm1222_vm4, %v1210_v38 }
 0x157   : > { %v1487_v52 = vpop.f32.mrb[6].mxu1 }
 0x158   : > { %v1203_v23 = vadd.f32 %v1487_v52, %v1417_v25  ;;  %v1197_v13 = vpop.f32.mrb[7].mxu1 }
 0x159   : > { %v1198_v2 = vadd.f32 %v1417_v25, %v1197_v13 }
 0x15a   : > { %v1221_v47 = vmax.f32 %v1203_v23, 0.0 }
 0x15b   : > { %v1220_v60 = vmax.f32 %v1198_v2, 0.0 }
 0x15c   : > { %1238 = vst.msk [vmem:[%s2330_s26 + $0x78] sm:$0xff] %vm1222_vm4, %v1221_v47  ;;  %v1475_v32 = vpop.f32.mrb[6].mxu0 }
 0x15d   : > { %v1163_v10 = vadd.f32 %v1475_v32, %v1417_v25  ;;  %1237 = vst.msk [vmem:[%s2330_s26 + $0x70] sm:$0xff] %vm1222_vm4, %v1220_v60  ;;  %v1157_v5 = vpop.f32.mrb[7].mxu0 }
 0x15e   : > { %v1158_v35 = vadd.f32 %v1417_v25, %v1157_v5 }
 0x15f   : > { %v1213_v14 = vmax.f32 %v1163_v10, 0.0 }
 0x160   : > { %v1212_v7 = vmax.f32 %v1158_v35, 0.0 }
 0x161   : > { %1230 = vst.msk [vmem:[%s2330_s26 + $0x38] sm:$0xff] %vm1222_vm4, %v1213_v14 }
 0x162   : > { %1229 = vst.msk [vmem:[%s2330_s26 + $0x30] sm:$0xff] %vm1222_vm4, %v1212_v7 }
 0x163 PF: > { %s19_s9 = sadd.s32 1, %s1568_s9   ;;  %s2441_s27 = smov %s1560_s29 }
 0x164   : > { %p16_p12 = scmp.ge.s32.totalorder %s19_s9, 6   ;;  %s2442_s28 = smov %s1564_s30 }
 0x165   : > { %s2443_s29 = smov %s2446_s7  ;;  %s2444_s30 = smov %s2450_s10 }
 0x166   :  { %18 = sbr.rel (!%p16_p12) target bundleno = 3 (0x3), region = 88 }

</bundles_post_ra>
